<compile_context>
chip_gen: v5e
topology: v5e:2x2
jax: 0.10.0
libtpu: 0.0.40
codegen_flags: <defaults>
</compile_context>

<pallas_src>
import math

import jax
import jax.numpy as jnp
from jax.experimental import pallas as pl
from jax.experimental.pallas import tpu as pltpu


def build_positional_encoding(max_len: int, embed_dim: int) -> jnp.ndarray:
    """Sinusoidal table, shape (max_len, embed_dim), float32 (even embed_dim).

    encoding[:, 0::2] = sin(position * div_term)
    encoding[:, 1::2] = cos(position * div_term)
    """
    position = jnp.arange(0, max_len, dtype=jnp.float32)[:, None]          # (L, 1)
    div_term = jnp.exp(
        jnp.arange(0, embed_dim, 2, dtype=jnp.float32)
        * (-math.log(10000.0) / embed_dim)
    )                                                                       # (E/2,)
    ang = position * div_term                                               # (L, E/2)
    # interleave sin/cos along the last axis -> (L, E)
    enc = jnp.stack([jnp.sin(ang), jnp.cos(ang)], axis=-1).reshape(max_len, embed_dim)
    return enc.astype(jnp.float32)


def _pos_enc_add_kernel(x_ref, enc_ref, o_ref):
    # x_ref, enc_ref, o_ref: (1, S*E) lane-dense tiles, all already in x.dtype.
    # Pure VPU add; no broadcast, no cast.
    o_ref[...] = x_ref[...] + enc_ref[...]


def positional_encoding_forward(x: jnp.ndarray, encoding: jnp.ndarray) -> jnp.ndarray:
    """x: (B, S, E); encoding: (max_len, E). Returns x + encoding[:S]."""
    B, S, E = x.shape
    SE = S * E

    # Wrapper-side layout plumbing (no extra compute in the hot path):
    #   pre-cast enc once, flatten (S, E) -> S*E so the lane axis is wide
    #   (3200 = 25 * 128 here -> unmasked full-width stores).
    enc_flat = encoding[:S, :].astype(x.dtype).reshape(1, SE)   # (1, S*E)
    x_flat = x.reshape(B, 1, SE)                                # (B, 1, S*E)

    out = pl.pallas_call(
        _pos_enc_add_kernel,
        out_shape=jax.ShapeDtypeStruct((B, 1, SE), x.dtype),
        grid_spec=pltpu.PrefetchScalarGridSpec(
            num_scalar_prefetch=0,
            grid=(B,),
            in_specs=[
                # batch dim squeezed out of the kernel view -> (1, S*E) ref
                pl.BlockSpec((pl.Squeezed(), 1, SE), lambda b: (b, 0, 0)),
                # constant block index across the grid -> enc stays VMEM-resident
                pl.BlockSpec((1, SE), lambda b: (0, 0)),
            ],
            out_specs=pl.BlockSpec((pl.Squeezed(), 1, SE), lambda b: (b, 0, 0)),
        ),
        compiler_params=pltpu.CompilerParams(
            dimension_semantics=("parallel",),   # keeps both v7x TCs busy (2 blocks)
        ),
    )(x_flat, enc_flat)

    return out.reshape(B, S, E)


if __name__ == "__main__":
    embed_dim = 64
    seq_len = 50
    batch = 2
    max_len = 128  # small synthetic max_len (module default is 5000)

    key = jax.random.PRNGKey(0)
    x = jax.random.normal(key, (batch, seq_len, embed_dim), dtype=jnp.float32)

    encoding = build_positional_encoding(max_len, embed_dim)

    out = positional_encoding_forward(x, encoding)
    out = jax.block_until_ready(out)

    # sanity check against plain-JAX reference
    ref = x + encoding[None, :seq_len, :]
    assert out.shape == (batch, seq_len, embed_dim)
    assert jnp.allclose(out, ref, atol=1e-6), "mismatch vs reference"

    print("KERNEL_OK")
</pallas_src>

<mosaic_0001>
module attributes {stable_mosaic.version = 11 : i64} {
  func.func @_pos_enc_add_kernel(%arg0: i32, %arg1: memref<1x1x3200xf32, #tpu.memory_space<vmem>>, %arg2: memref<1x3200xf32, #tpu.memory_space<vmem>>, %arg3: memref<1x1x3200xf32, #tpu.memory_space<vmem>>) attributes {dimension_semantics = [#tpu.dimension_semantics<parallel>], iteration_bounds = array<i64: 2>, scalar_prefetch = 0 : i64, scratch_operands = 0 : i64, tpu.core_type = #tpu.core_type<tc>, window_params = [{transform_indices = @transform_0, window_bounds = array<i64: 1, 1, 3200>}, {pipeline_mode = #tpu.pipeline_mode<synchronous>, transform_indices = @transform_1, window_bounds = array<i64: 1, 3200>}, {transform_indices = @transform_2, window_bounds = array<i64: 1, 1, 3200>}]} {
    %c0 = arith.constant 0 : index
    %c0_0 = arith.constant 0 : index
    %c0_1 = arith.constant 0 : index
    %0 = vector.load %arg1[%c0, %c0_0, %c0_1] : memref<1x1x3200xf32, #tpu.memory_space<vmem>>, vector<1x1x3200xf32>
    %1 = vector.shape_cast %0 : vector<1x1x3200xf32> to vector<1x3200xf32>
    %c0_2 = arith.constant 0 : index
    %c0_3 = arith.constant 0 : index
    %2 = vector.load %arg2[%c0_2, %c0_3] : memref<1x3200xf32, #tpu.memory_space<vmem>>, vector<1x3200xf32>
    %3 = arith.addf %1, %2 : vector<1x3200xf32>
    %c0_4 = arith.constant 0 : index
    %c0_5 = arith.constant 0 : index
    %c0_6 = arith.constant 0 : index
    %4 = vector.load %arg3[%c0_4, %c0_5, %c0_6] : memref<1x1x3200xf32, #tpu.memory_space<vmem>>, vector<1x1x3200xf32>
    %5 = vector.shape_cast %4 : vector<1x1x3200xf32> to vector<1x3200xf32>
    %6 = vector.shape_cast %3 : vector<1x3200xf32> to vector<1x1x3200xf32>
    tpu.vector_store %arg3[%c0_4, %c0_5, %c0_6], %6 {strides = array<i32>} : memref<1x1x3200xf32, #tpu.memory_space<vmem>>, vector<1x1x3200xf32>,
    return
  }
  func.func @transform_0(%arg0: i32) -> (i32, i32, i32) {
    %c0_i32 = arith.constant 0 : i32
    %c0_i32_0 = arith.constant 0 : i32
    %c0_i32_1 = arith.constant 0 : i32
    return %arg0, %c0_i32, %c0_i32_0 : i32, i32, i32
  }
  func.func @transform_1(%arg0: i32) -> (i32, i32) {
    %c0_i32 = arith.constant 0 : i32
    %c0_i32_0 = arith.constant 0 : i32
    %c0_i32_1 = arith.constant 0 : i32
    return %c0_i32, %c0_i32_0 : i32, i32
  }
  func.func @transform_2(%arg0: i32) -> (i32, i32, i32) {
    %c0_i32 = arith.constant 0 : i32
    %c0_i32_0 = arith.constant 0 : i32
    %c0_i32_1 = arith.constant 0 : i32
    return %arg0, %c0_i32, %c0_i32_0 : i32, i32, i32
  }
}

</mosaic_0001>

<bundles_post_ra>
// kernel: tpu_custom_call.1
= control target key start
LH: loop header
LB: loop body
LE: loop exit
PB: predicated region body
PF: predicated region fallthrough
CT: control target
= control target key end

     0   :  { %7 = vsyncpa [#allocation3], 0  ;;  %s647_s0 = inlined_call_operand.hbm [shape: f32[2,1,3200], index: 0, kind: input, shape index: {}]   ;;  %s648_s1 = inlined_call_operand.hbm [shape: f32[1,3200], index: 1, kind: input, shape index: {}]   ;;  %s649_s2 = inlined_call_operand.hbm [shape: f32[2,1,3200], index: 2, kind: output, shape index: {}]  }
   0x1   :  { %9 = vsyncpa [#allocation3 + $0x1], 0 }
   0x2   :  { %10 = vsyncpa [#allocation6], 0 }
   0x3   :  { %11 = vsyncpa [#allocation4], 0 }
   0x4   :  { %13 = vsyncpa [#allocation4 + $0x1], 0  ;;  %s509_s9 = smov 0   ;;  %s511_s10 = smov 0  }
   0x5   :  { %s513_s11 = smov 0   ;;  %s515_s12 = smov 0  }
   0x6 LB: > { %s530_s13 = sadd.s32 4294967295, %s491_s12   ;;  %s292_s14 = sadd.s32 4294967294, %s491_s12   ;;  %s491_s12 = sphi %s515_s12, %s659_s12   ;;  %s487_s11 = sphi %s513_s11, %s658_s11   ;;  %s483_s10 = sphi %s511_s10, %s657_s10   ;;  %s479_s9 = sphi %s509_s9, %s656_s9  }
   0x7   : > { %p39_p0 = scmp.ne.s32.totalorder %s483_s10, %s479_s9  ;;  %p40_p1 = scmp.eq.s32.totalorder %s530_s13, 0 }
   0x8   : > { %p84_p2 = scmp.eq.s32.totalorder %s530_s13, 1  ;;  %p90_p3 = scmp.eq.s32.totalorder %s292_s14, 1 }
   0x9   : > { %p539_p4 = por %p40_p1, %p39_p0  ;;  %p293_p5 = scmp.ge.s32.totalorder %s491_s12, 1 }
   0xa   : > { %p544_p6 = por %p90_p3, %p39_p0  ;;  %p97_p7 = scmp.lt.s32.totalorder %s491_s12, 3 }
   0xb   : > { %s109_s19 = sshll.u32 %s648_s1, 4  ;;  %s493_s21 = smov [#allocation5]   ;;  %s110_s19 = int_to_ptr.hbm [resolvable:$true] %s109_s19 }
   0xc   : > { %p552_p8 = pnand %p293_p5, %p97_p7  ;;  %s111_s22 = sshll.u32 %s493_s21, 4  ;;  %s112_s22 = int_to_ptr.vmem [resolvable:$true] %s111_s22 }
   0xd   : > { %s562_s23 = sadd.s32 1, %s491_s12   ;;  %s26_s24 = sadd.s32 1, %s487_s11 }
   0xe   : > { %p312_p10 = pneg %p552_p8  ;;  %s23_s25 = ssub.s32 %s491_s12, %s562_s23 }
   0xf   : > { %p24_p12 = scmp.eq.s32.totalorder %s23_s25, 0  ;;  %p33_p13 = scmp.ne.s32.totalorder %s487_s11, %s483_s10 }
  0x10   : > { %p313_p11 = pnand %p312_p10, %p40_p1  ;;  %p34_p0 = scmp.eq.s32.totalorder %s491_s12, 0 }
  0x11   : > { %p325_p3 = scmp.lt.s32.totalorder %s491_s12, 2  ;;  %p576_p7 = por %p84_p2, %p33_p13 }
  0x12   : > { %315 = dma.hbm_to_vmem [thread:$0]  (!%p313_p11), %s110_s19, 400, %s112_s22, [#allocation6]  }
  0x13   : > { %s572_s26 = scalar_select %p24_p12, %s487_s11, %s26_s24  }
  0x14   : > { %p35_p5 = por %p34_p0, %p33_p13  ;;  %s122_s28 = sand.u32 1, %s487_s11  }
  0x15   : > { %s301_s29 = smul.u32 25, %s491_s12  ;;  %s123_s17 = scalar_lea.sflag [#allocation3], %s122_s28 }
  0x16   : > { %s300_s30 = smul.u32 25, %s122_s28  ;;  %p585_p10 = pnand %p325_p3, %p35_p5 }
  0x17   : > { %s130_s5 = scalar_lea.hbm %s647_s0, %s301_s29  ;;  %s398_s24 = scalar_lea.hbm %s647_s0, 50 }
  0x18   : > { %s132_s7 = sshll.u32 %s130_s5, 4  ;;  %s126_s8 = scalar_lea.vmem [#allocation2], %s300_s30  ;;  %s133_s7 = int_to_ptr.hbm [resolvable:$true] %s132_s7 }
  0x19   : > { %s134_s14 = sshll.u32 %s126_s8, 4  ;;  %s391_s18 = sshra.s32 %s133_s7, 4  ;;  %s135_s14 = int_to_ptr.vmem [resolvable:$true] %s134_s14  ;;  %s392_s18 = int_to_ptr.hbm [resolvable:$true] %s391_s18 }
  0x1a   : > { %s393_s19 = scalar_lea.hbm %s392_s18, 25  ;;  %p395_p11 = pneg %p585_p10 }
  0x1b   : > { %p394_p2 = scmp.ne.s32.totalorder %s392_s18, %s393_s19  ;;  %p399_p0 = scmp.lt.s32.totalorder %s392_s18, %s647_s0 }
  0x1c   : > { %p400_p3 = scmp.lt.s32.totalorder %s398_s24, %s393_s19 }
  0x1d   : > { %p396_p12 = pnand %p395_p11, %p394_p2 }
  0x1e   : > { %p401_p5 = por %p400_p3, %p399_p0 }
  0x1f   : > { %p397_p13 = pneg %p396_p12 }
  0x21   : > { %p402_p9 = pnand %p401_p5, %p397_p13 }
  0x23   : > { %405 = shalt.err (!%p402_p9)
}
  0x24   : > { %319 = dma.hbm_to_vmem [thread:$0]  (!%p585_p10), %s133_s7, 400, %s135_s14, %s123_s17  }
  0x25   : > { %143 = sbr.rel (%p552_p8) target bundleno = 61 (0x3d), region = 28  ;;  %s602_s28 = sand.u32 (!%p552_p8), 1, %s483_s10  }
  0x26   : > { %s302_s30 = smul.u32 (!%p552_p8), 25, %s602_s28  ;;  %s146_s3 = scalar_lea.sflag (!%p552_p8), [#allocation3], %s602_s28 }
  0x28   : > { %s149_s4 = scalar_lea.vmem (!%p552_p8), [#allocation2], %s302_s30 }
  0x2a   : > { %466 = dma.done.wait (%p539_p4), %s146_s3, 400  }
  0x2b   : > { %468 = vsyncadd (%p539_p4), %s146_s3, 4294966896 }
  0x2c   : > { %470 = dma.done.wait (%p40_p1), [#allocation6], 400  }
  0x2d   : > { %472 = vsyncadd (%p40_p1), [#allocation6], 4294966896  ;;  %s303_s20 = smul.u32 25, %s530_s13  ;;  %v191_v0 = vlaneseq  ;;  %v176_v1 = vld [vmem:[%s149_s4] sm:$0xff]  ;;  %v177_v3 = vld [vmem:[%s149_s4 + $0x8] sm:$0xff]  ;;  %s175_s8 = scalar_lea.vmem [#allocation7], %s302_s30 }
  0x2e   : > { %v180_v2 = vld [vmem:[#allocation5] sm:$0xff]  ;;  %s209_s15 = sshll.u32 %s175_s8, 4  ;;  %v181_v5 = vld [vmem:[#allocation5 + $0x8] sm:$0xff]  ;;  %v182_v7 = vld [vmem:[#allocation5 + $0x10] sm:$0xff]  ;;  %s197_s13 = scalar_lea.sflag [#allocation4], %s602_s28  ;;  %s210_s15 = int_to_ptr.vmem [resolvable:$true] %s209_s15 }
  0x2f   : > { %s207_s7 = scalar_lea.hbm %s649_s2, %s303_s20  ;;  %v184_v4 = vadd.f32 %v180_v2, %v176_v1  ;;  %v178_v6 = vld [vmem:[%s149_s4 + $0x10] sm:$0xff]  ;;  %v185_v8 = vadd.f32 %v181_v5, %v177_v3  ;;  %v179_v10 = vld [vmem:[%s149_s4 + $0x18] sm:$0x1]  ;;  %vm193_vm0 = vcmp.lt.s32.totalorder %v191_v0, 128  ;;  %s441_s22 = scalar_lea.hbm %s649_s2, 50 }
  0x30   : > { %s211_s14 = sshll.u32 %s207_s7, 4  ;;  %v186_v9 = vadd.f32 %v182_v7, %v178_v6  ;;  %v183_v11 = vld [vmem:[#allocation5 + $0x18] sm:$0x1]  ;;  %s212_s14 = int_to_ptr.hbm [resolvable:$true] %s211_s14 }
  0x31   : > { %188 = vst [vmem:[%s175_s8] sm:$0xff] %v184_v4  ;;  %v187_v12 = vadd.f32 %v183_v11, %v179_v10  ;;  %s435_s17 = sshra.s32 %s212_s14, 4  ;;  %s436_s17 = int_to_ptr.hbm [resolvable:$true] %s435_s17 }
  0x32   : > { %189 = vst [vmem:[%s175_s8 + $0x8] sm:$0xff] %v185_v8  ;;  %s437_s18 = scalar_lea.hbm %s436_s17, 25  ;;  %p442_p9 = scmp.lt.s32.totalorder %s436_s17, %s649_s2 }
  0x33   : > { %190 = vst [vmem:[%s175_s8 + $0x10] sm:$0xff] %v186_v9  ;;  %p438_p1 = scmp.ne.s32.totalorder %s436_s17, %s437_s18  ;;  %p443_p10 = scmp.lt.s32.totalorder %s441_s22, %s437_s18 }
  0x34   : > { %195 = vst.msk [vmem:[%s175_s8 + $0x18] sm:$0x1] %vm193_vm0, %v187_v12 }
  0x35   : > { %p439_p4 = pnand %p438_p1, %p576_p7  ;;  %p444_p2 = por %p443_p10, %p442_p9 }
  0x37   : > { %p440_p8 = pneg %p439_p4 }
  0x39   : > { %p445_p11 = pnand %p444_p2, %p440_p8 }
  0x3b   : > { %448 = shalt.err (!%p445_p11)
}
  0x3c   : > { %310 = dma.vmem_to_hbm [thread:$0]  (%p576_p7), %s210_s15, 400, %s212_s14, %s197_s13  }
  0x3d PF: > { %s223_s29 = sand.u32 1, %s479_s9   ;;  %p655_p12 = scmp.ge.s32.totalorder %s491_s12, 2 }
  0x3e   : > { %s224_s28 = scalar_lea.sflag [#allocation4], %s223_s29 }
  0x3f   : > { %p321_p13 = pnand %p655_p12, %p544_p6 }
  0x41   : > { %p322_p0 = pneg %p321_p13 }
  0x43   : > { %474 = dma.done.wait (%p322_p0), %s224_s28, 400  }
  0x44   : > { %476 = vsyncadd (%p322_p0), %s224_s28, 4294966896  ;;  %p16_p3 = scmp.ge.s32.totalorder %s562_s23, 4   ;;  %s656_s9 = smov %s483_s10 }
  0x45   : > { %s657_s10 = smov %s487_s11  ;;  %s658_s11 = smov %s572_s26 }
  0x46   : > { %s659_s12 = smov %s562_s23  ;;  %18 = sbr.rel (!%p16_p3) target bundleno = 6 (0x6), region = 77 }
  0x4b   :  { %230 = vsyncpa [#allocation3], 1 }
  0x4c   :  { %232 = vsyncpa [#allocation3 + $0x1], 1 }
  0x4d   :  { %233 = vsyncpa [#allocation6], 1 }
  0x4e   :  { %234 = vsyncpa [#allocation4], 1 }
  0x4f   :  { %236 = vsyncpa [#allocation4 + $0x1], 1 }

</bundles_post_ra>
